<compile_context>
chip_gen: v5e
topology: v5e:2x2
jax: 0.10.0
libtpu: 0.0.40
codegen_flags: <defaults>
</compile_context>

<pallas_src>
import functools
import math

import jax
import jax.numpy as jnp
from jax import lax
from jax.experimental import pallas as pl
from jax.experimental.pallas import tpu as pltpu

RMS_EPS = 1.1920929e-07   # torch.finfo(float32).eps == nn.RMSNorm(eps=None) default
MASK_NEG = 1e30

# bf16 matmul operands on real TPUs (MXU path); f32 elsewhere — interpret-mode
# CPU execution does not support BF16 x BF16 = F32 dots.
_ON_TPU = jax.default_backend() == "tpu"
COMPUTE_DTYPE = jnp.bfloat16 if _ON_TPU else jnp.float32


# ----------------------------- kernel helpers ------------------------------

def _rmsnorm(x, w):
    # x: [L, E] f32, w: [1, E] f32
    ms = jnp.mean(x * x, axis=-1, keepdims=True)
    return x * lax.rsqrt(ms + RMS_EPS) * w


def _recip(x):
    return pl.reciprocal(x, approx=True) if _ON_TPU else 1.0 / x


def _roll_half(t, hd):
    # Swap the two halves along the head dim (axis 1 of [H, qd, Lp]).  A roll by
    # half the dim is direction-independent, so jnp.roll matches pltpu.roll.
    if _ON_TPU:
        return pltpu.roll(t, hd, 1)
    return jnp.roll(t, hd, axis=1)


# ----------------------- fused encoder-stack kernel ------------------------
# One pallas_call runs a whole stack of pre-norm transformer layers:
#   x = x + RoPE-MHSA(RMSNorm(x));  x = x + SwiGLU-FFN(RMSNorm(x))

def _stack_kernel(x_ref, mask_ref, n1_ref, wqkv_ref, wo_ref, n2_ref, wgu_ref,
                  wd_ref, cos_ref, sin_ref, o_ref,
                  *, n_heads, query_dim, value_dim, masked):
    H, qd, vd = n_heads, query_dim, value_dim
    hd = qd // 2
    HQ, HV = H * qd, H * vd

    @pl.when(pl.program_id(1) == 0)            # layer 0: load the stack input
    def _():
        o_ref[0] = x_ref[0]

    x = o_ref[0]                                # [Lp, E] f32, VMEM-resident across layers
    Lp = x.shape[0]

    # --- pre-norm + RoPE multi-head self-attention + residual ---
    h = _rmsnorm(x, n1_ref[0]).astype(COMPUTE_DTYPE)
    hT = jnp.transpose(h)                       # single shared [E, Lp] transpose (bf16)
    qkvT = jnp.dot(wqkv_ref[0], hT, preferred_element_type=jnp.float32)   # [2HQ+HV, Lp]

    qT = qkvT[:HQ] * (1.0 / math.sqrt(qd))      # fold softmax scale into Q once
    kT = qkvT[HQ:2 * HQ]
    vT = qkvT[2 * HQ:]

    q3 = qT.reshape(H, qd, Lp)                  # d-major heads: lanes = sequence
    k3 = kT.reshape(H, qd, Lp)
    v3 = vT.reshape(H, vd, Lp).astype(COMPUTE_DTYPE)

    cos = cos_ref[...][None]                    # [1, qd, Lp]
    sin = sin_ref[...][None]                    # [1, qd, Lp]   (rotate-half sign folded in)

    def _rope(t):                               # rotate-half via a head-dim roll (XLU)
        return t * cos + _roll_half(t, hd) * sin

    qr = _rope(q3).astype(COMPUTE_DTYPE)
    kr = _rope(k3).astype(COMPUTE_DTYPE)

    # head-batched scores [H, Lq, Lk], f32 accumulation
    s = jnp.einsum('hdq,hdk->hqk', qr, kr, preferred_element_type=jnp.float32)

    if masked:
        m = mask_ref[0]                         # [1, Lp]  (1.0 valid / 0.0 pad)
        s = s + ((m - 1.0) * MASK_NEG)[None]    # key-only additive bias, O(Lp)

    s = s - jnp.max(s, axis=-1, keepdims=True)
    p = jnp.exp(s)
    p = (p * _recip(jnp.sum(p, axis=-1, keepdims=True))).astype(COMPUTE_DTYPE)

    # attention output, kept transposed: [H, vd, Lq] -> flatten to [H*vd, Lq]
    avT = jnp.einsum('hdk,hqk->hdq', v3, p, preferred_element_type=jnp.float32)
    avT2 = avT.reshape(HV, Lp).astype(COMPUTE_DTYPE)
    # output projection with a transposed-LHS contraction (no explicit transpose)
    attn = lax.dot_general(avT2, wo_ref[0], (((0,), (0,)), ((), ())),
                           preferred_element_type=jnp.float32)            # [Lp, E]
    x = x + attn

    # --- pre-norm + SwiGLU FFN + residual ---
    h2 = _rmsnorm(x, n2_ref[0]).astype(COMPUTE_DTYPE)
    gu = jnp.dot(h2, wgu_ref[0], preferred_element_type=jnp.float32)      # [Lp, 2*Fh]
    Fh = gu.shape[-1] // 2
    g, u = gu[:, :Fh], gu[:, Fh:]
    f = (g * jax.nn.sigmoid(g) * u).astype(COMPUTE_DTYPE)
    o_ref[0] = x + jnp.dot(f, wd_ref[0], preferred_element_type=jnp.float32)


def _stack_vmem_bytes(Lp, E, H, qd, vd, Fh, w_itemsize):
    f32 = 4
    HQ, HV = H * qd, H * vd
    QKVo = 2 * HQ + HV
    w_layer = (QKVo * E + HV * E + 2 * E * Fh + Fh * E + 2 * E) * w_itemsize
    nb = 2 * w_layer                                   # per-layer weights, double-buffered
    nb += 2 * 2 * Lp * E * f32                         # x input + resident residual output
    nb += (2 * qd * Lp + Lp) * f32                     # RoPE tables + mask
    nb += (4 * Lp * E + 2 * QKVo * Lp + 3 * H * Lp * Lp
           + 2 * HV * Lp + 3 * Lp * Fh) * f32          # in-kernel intermediates
    return nb


def _vmem_limit(nbytes, headroom=1.4):
    # >= default-ish 32 MiB, capped at 48 MiB: leaves headroom for Mosaic
    # internal scratch on v7x (64 MiB / TensorCore).
    return int(min(max(int(nbytes * headroom), 32 * 1024 * 1024), 48 * 1024 * 1024))


def encoder_stack(x, mask, sp, cos, sin, *, n_heads, query_dim, value_dim, masked):
    """Runs an entire pre-norm encoder stack (all its layers) in one pallas_call."""
    B, Lp, E = x.shape
    NL = sp["n1"].shape[0]
    HQ, HV = n_heads * query_dim, n_heads * value_dim
    QKVo = 2 * HQ + HV
    Fh = sp["wgu"].shape[-1] // 2

    kernel = functools.partial(_stack_kernel, n_heads=n_heads, query_dim=query_dim,
                               value_dim=value_dim, masked=masked)

    def wspec(*shape):                 # per-layer weight, streamed along the layer axis
        nz = (0,) * len(shape)
        return pl.BlockSpec((1,) + shape, lambda b, l: (l,) + nz)

    def cspec(*shape):                 # constant across the whole grid -> single buffer
        nz = (0,) * len(shape)
        return pl.BlockSpec(shape, lambda b, l: nz, pipeline_mode=pl.Buffered(1))

    vmem = _vmem_limit(_stack_vmem_bytes(Lp, E, n_heads, query_dim, value_dim, Fh,
                                         jnp.dtype(COMPUTE_DTYPE).itemsize))
    return pl.pallas_call(
        kernel,
        out_shape=jax.ShapeDtypeStruct((B, Lp, E), jnp.float32),
        grid=(B, NL),
        in_specs=[
            pl.BlockSpec((1, Lp, E), lambda b, l: (b, 0, 0)),   # x (fetched once per batch row)
            pl.BlockSpec((1, 1, Lp), lambda b, l: (b, 0, 0)),   # padding mask (float)
            wspec(1, E),                                        # norm1 weight
            wspec(QKVo, E),                                     # fused Wq|Wk|Wv  [out, in]
            wspec(HV, E),                                       # Wo              [in, out]
            wspec(1, E),                                        # norm2 weight
            wspec(E, 2 * Fh),                                   # fused Wg|Wu     [in, out]
            wspec(Fh, E),                                       # Wd              [in, out]
            cspec(query_dim, Lp),                               # cos table (halves duplicated)
            cspec(query_dim, Lp),                               # sin table (sign folded)
        ],
        # constant over the layer axis -> residual stays resident in VMEM
        out_specs=pl.BlockSpec((1, Lp, E), lambda b, l: (b, 0, 0)),
        compiler_params=pltpu.CompilerParams(
            dimension_semantics=("parallel", "arbitrary"), vmem_limit_bytes=vmem),
    )(x, mask, sp["n1"], sp["wqkv"], sp["wo"], sp["n2"], sp["wgu"], sp["wd"], cos, sin)


# ------------------------- fused epilogue kernel ----------------------------
# q_emb = final_linear(final_q_norm(xq)); k_emb = final_k_norm(xk)
# logits = q_emb @ k_emb^T written as a lane-dense [Lp, Lp_pad] slab;
# the root query row and the key pad columns are sliced off by the caller.

def _epilogue_kernel(xq_ref, xk_ref, qn_ref, kn_ref, wl_ref, o_ref):
    qn = _rmsnorm(xq_ref[0], qn_ref[...]).astype(COMPUTE_DTYPE)       # all Lp rows
    q_emb = jnp.dot(qn, wl_ref[...], preferred_element_type=jnp.float32)
    kn = _rmsnorm(xk_ref[0], kn_ref[...]).astype(COMPUTE_DTYPE)       # [Lp, E]
    pad_rows = o_ref.shape[2] - kn.shape[0]
    if pad_rows:                                 # in-kernel zero-pad -> lane-dense store
        kn = jnp.concatenate(
            [kn, jnp.zeros((pad_rows, kn.shape[1]), kn.dtype)], axis=0)
    o_ref[0] = lax.dot_general(q_emb.astype(COMPUTE_DTYPE), kn,
                               (((1,), (1,)), ((), ())),
                               preferred_element_type=jnp.float32)     # [Lp, Lp_pad]


def epilogue(xq, xk, qn, kn, wl):
    B, Lp, E = xq.shape
    Lp_pad = ((Lp + 127) // 128) * 128
    w_isz = jnp.dtype(COMPUTE_DTYPE).itemsize
    nb = (2 * (2 * Lp * E + Lp * Lp_pad) * 4 + E * E * w_isz
          + (2 * Lp_pad * E + Lp * Lp_pad + 2 * Lp * E) * 4)
    return pl.pallas_call(
        _epilogue_kernel,
        out_shape=jax.ShapeDtypeStruct((B, Lp, Lp_pad), jnp.float32),
        grid=(B,),
        in_specs=[
            pl.BlockSpec((1, Lp, E), lambda b: (b, 0, 0)),
            pl.BlockSpec((1, Lp, E), lambda b: (b, 0, 0)),
            pl.BlockSpec((1, E), lambda b: (0, 0), pipeline_mode=pl.Buffered(1)),
            pl.BlockSpec((1, E), lambda b: (0, 0), pipeline_mode=pl.Buffered(1)),
            pl.BlockSpec((E, E), lambda b: (0, 0), pipeline_mode=pl.Buffered(1)),
        ],
        out_specs=pl.BlockSpec((1, Lp, Lp_pad), lambda b: (b, 0, 0)),
        compiler_params=pltpu.CompilerParams(
            dimension_semantics=("parallel",), vmem_limit_bytes=_vmem_limit(nb)),
    )(xq, xk, qn, kn, wl)                         # [B, Lp, Lp_pad]


# ------------------------------ parameters ---------------------------------

def rope_tables(Lp, qd):
    """[qd, Lp] cos/sin tables for d-major RoPE; rotate-half sign folded into sin."""
    hd = qd // 2
    inv_freq = 1.0 / (10000.0 ** (jnp.arange(hd, dtype=jnp.float32) / hd))
    ang = inv_freq[:, None] * jnp.arange(Lp, dtype=jnp.float32)[None, :]   # [hd, Lp]
    cos = jnp.cos(ang)
    sin = jnp.sin(ang)
    return (jnp.concatenate([cos, cos], axis=0),
            jnp.concatenate([-sin, sin], axis=0))


def init_stack_params(key, n_layers, E, n_heads, qd, vd, Fh, scale=0.02):
    HQ, HV = n_heads * qd, n_heads * vd
    ks = jax.random.split(key, 4)

    def w(k, shape):
        return (scale * jax.random.normal(k, shape, jnp.float32)).astype(COMPUTE_DTYPE)

    return dict(
        n1=jnp.ones((n_layers, 1, E), jnp.float32),
        n2=jnp.ones((n_layers, 1, E), jnp.float32),
        wqkv=w(ks[0], (n_layers, 2 * HQ + HV, E)),   # fused Q|K|V, torch-native [out, in]
        wo=w(ks[1], (n_layers, HV, E)),              # [in, out]
        wgu=w(ks[2], (n_layers, E, 2 * Fh)),         # fused gate|up, [in, out]
        wd=w(ks[3], (n_layers, Fh, E)),              # [in, out]
    )


def init_params(key, E, n_layers, final_n_layers, n_heads, qd, vd, Fh):
    k1, k2, k3 = jax.random.split(key, 3)
    return dict(
        root=jnp.zeros((E,), jnp.float32),                     # nn.Parameter zeros
        encoder=init_stack_params(k1, n_layers, E, n_heads, qd, vd, Fh),
        final_q=init_stack_params(k2, final_n_layers, E, n_heads, qd, vd, Fh),
        final_k=init_stack_params(k3, final_n_layers, E, n_heads, qd, vd, Fh),
        final_q_norm=jnp.ones((1, E), jnp.float32),
        final_k_norm=jnp.ones((1, E), jnp.float32),
        final_linear=jnp.zeros((E, E), COMPUTE_DTYPE),         # nn.init.zeros_
    )


# ------------------------------- forward -----------------------------------

def dependency_parser_forward(params, embeddings, padding_mask=None, *,
                              n_heads, query_dim, value_dim):
    B, L, E = embeddings.shape
    Lp = L + 1
    # prepend the (learned, zero-init) root embedding
    root = jnp.broadcast_to(params["root"].astype(jnp.float32)[None, None, :], (B, 1, E))
    x = jnp.concatenate([root, embeddings.astype(jnp.float32)], axis=1)    # [B, Lp, E]

    masked = padding_mask is not None
    if masked:
        pm = jnp.concatenate([jnp.ones((B, 1), bool), padding_mask.astype(bool)], axis=1)
        mask = pm.astype(jnp.float32)[:, None, :]                          # [B, 1, Lp]
    else:
        mask = jnp.ones((B, 1, Lp), jnp.float32)                           # unused in-kernel

    cos, sin = rope_tables(Lp, query_dim)
    stack = functools.partial(encoder_stack, n_heads=n_heads, query_dim=query_dim,
                              value_dim=value_dim, masked=masked)

    x = stack(x, mask, params["encoder"], cos, sin)       # shared encoder
    xq = stack(x, mask, params["final_q"], cos, sin)      # query branch
    xk = stack(x, mask, params["final_k"], cos, sin)      # key branch

    logits = epilogue(xq, xk, params["final_q_norm"], params["final_k_norm"],
                      params["final_linear"])             # [B, Lp, Lp_pad]
    return logits[:, 1:, :Lp]                             # [B, L, L+1]


# --------------------------------- demo -------------------------------------

if __name__ == "__main__":
    # small shapes consistent with the module: E divisible by n_heads
    B, L, E = 2, 7, 32
    n_heads = 4
    query_dim = E // n_heads        # 8
    value_dim = E // n_heads        # 8
    ffn_hidden_dim = 4 * E          # 128
    n_layers, final_n_layers = 2, 2

    key = jax.random.PRNGKey(0)
    k_params, k_x = jax.random.split(key)
    params = init_params(k_params, E, n_layers, final_n_layers,
                         n_heads, query_dim, value_dim, ffn_hidden_dim)
    embeddings = jax.random.normal(k_x, (B, L, E), jnp.float32)
    padding_mask = jnp.array([[True] * L,
                              [True] * (L - 2) + [False] * 2])             # [B, L]

    logits = dependency_parser_forward(params, embeddings, padding_mask=padding_mask,
                                       n_heads=n_heads, query_dim=query_dim,
                                       value_dim=value_dim)
    logits = jax.block_until_ready(logits)

    assert logits.shape == (B, L, L + 1), logits.shape
    assert bool(jnp.all(jnp.isfinite(logits)))
    print("KERNEL_OK")
</pallas_src>

<mosaic_0001>
module attributes {stable_mosaic.version = 11 : i64} {
  func.func @_stack_kernel(%arg0: i32, %arg1: i32, %arg2: memref<1x8x32xf32, #tpu.memory_space<vmem>>, %arg3: memref<1x1x8xf32, #tpu.memory_space<vmem>>, %arg4: memref<1x1x32xf32, #tpu.memory_space<vmem>>, %arg5: memref<1x96x32xf32, #tpu.memory_space<vmem>>, %arg6: memref<1x32x32xf32, #tpu.memory_space<vmem>>, %arg7: memref<1x1x32xf32, #tpu.memory_space<vmem>>, %arg8: memref<1x32x256xf32, #tpu.memory_space<vmem>>, %arg9: memref<1x128x32xf32, #tpu.memory_space<vmem>>, %arg10: memref<8x8xf32, #tpu.memory_space<vmem>>, %arg11: memref<8x8xf32, #tpu.memory_space<vmem>>, %arg12: memref<1x8x32xf32, #tpu.memory_space<vmem>>) attributes {dimension_semantics = [#tpu.dimension_semantics<parallel>, #tpu.dimension_semantics<arbitrary>], iteration_bounds = array<i64: 2, 2>, scalar_prefetch = 0 : i64, scratch_operands = 0 : i64, tpu.core_type = #tpu.core_type<tc>, window_params = [{transform_indices = @transform_0, window_bounds = array<i64: 1, 8, 32>}, {transform_indices = @transform_1, window_bounds = array<i64: 1, 1, 8>}, {transform_indices = @transform_2, window_bounds = array<i64: 1, 1, 32>}, {transform_indices = @transform_3, window_bounds = array<i64: 1, 96, 32>}, {transform_indices = @transform_4, window_bounds = array<i64: 1, 32, 32>}, {transform_indices = @transform_5, window_bounds = array<i64: 1, 1, 32>}, {transform_indices = @transform_6, window_bounds = array<i64: 1, 32, 256>}, {transform_indices = @transform_7, window_bounds = array<i64: 1, 128, 32>}, {pipeline_mode = #tpu.pipeline_mode<synchronous>, transform_indices = @transform_8, window_bounds = array<i64: 8, 8>}, {pipeline_mode = #tpu.pipeline_mode<synchronous>, transform_indices = @transform_9, window_bounds = array<i64: 8, 8>}, {transform_indices = @transform_10, window_bounds = array<i64: 1, 8, 32>}]} {
    %c0_i32 = arith.constant 0 : i32
    %0 = arith.cmpi eq, %arg1, %c0_i32 : i32
    %1 = arith.extui %0 : i1 to i32
    %c0_i32_0 = arith.constant 0 : i32
    %2 = arith.cmpi ne, %1, %c0_i32_0 : i32
    scf.if %2 {
      %c0_49 = arith.constant 0 : index
      %c0_50 = arith.constant 0 : index
      %c0_51 = arith.constant 0 : index
      %111 = vector.load %arg2[%c0_49, %c0_50, %c0_51] : memref<1x8x32xf32, #tpu.memory_space<vmem>>, vector<1x8x32xf32>
      %112 = vector.shape_cast %111 : vector<1x8x32xf32> to vector<8x32xf32>
      %c0_52 = arith.constant 0 : index
      %c0_53 = arith.constant 0 : index
      %c0_54 = arith.constant 0 : index
      %113 = vector.load %arg12[%c0_52, %c0_53, %c0_54] : memref<1x8x32xf32, #tpu.memory_space<vmem>>, vector<1x8x32xf32>
      %114 = vector.shape_cast %113 : vector<1x8x32xf32> to vector<8x32xf32>
      %115 = vector.shape_cast %112 : vector<8x32xf32> to vector<1x8x32xf32>
      tpu.vector_store %arg12[%c0_52, %c0_53, %c0_54], %115 {strides = array<i32>} : memref<1x8x32xf32, #tpu.memory_space<vmem>>, vector<1x8x32xf32>,
    } else {
    }
    %c0 = arith.constant 0 : index
    %c0_1 = arith.constant 0 : index
    %c0_2 = arith.constant 0 : index
    %3 = vector.load %arg12[%c0, %c0_1, %c0_2] : memref<1x8x32xf32, #tpu.memory_space<vmem>>, vector<1x8x32xf32>
    %4 = vector.shape_cast %3 : vector<1x8x32xf32> to vector<8x32xf32>
    %c0_3 = arith.constant 0 : index
    %c0_4 = arith.constant 0 : index
    %c0_5 = arith.constant 0 : index
    %5 = vector.load %arg4[%c0_3, %c0_4, %c0_5] : memref<1x1x32xf32, #tpu.memory_space<vmem>>, vector<1x1x32xf32>
    %6 = vector.shape_cast %5 : vector<1x1x32xf32> to vector<1x32xf32>
    %7 = arith.mulf %4, %4 : vector<8x32xf32>
    %cst = arith.constant dense<0.000000e+00> : vector<8xf32>
    %8 = vector.multi_reduction <add>, %7, %cst [1] : vector<8x32xf32> to vector<8xf32>
    %9 = vector.shape_cast %8 : vector<8xf32> to vector<8x1xf32>
    %cst_6 = arith.constant 3.200000e+01 : f32
    %10 = vector.broadcast %cst_6 : f32 to vector<8x1xf32>
    %11 = arith.divf %9, %10 : vector<8x1xf32>
    %cst_7 = arith.constant 1.1920929E-7 : f32
    %12 = vector.broadcast %cst_7 : f32 to vector<8x1xf32>
    %13 = arith.addf %11, %12 : vector<8x1xf32>
    %14 = math.rsqrt %13 : vector<8x1xf32>
    %15 = vector.broadcast %14 : vector<8x1xf32> to vector<8x32xf32>
    %16 = arith.mulf %4, %15 : vector<8x32xf32>
    %17 = vector.broadcast %6 : vector<1x32xf32> to vector<8x32xf32>
    %18 = arith.mulf %16, %17 : vector<8x32xf32>
    %19 = tpu.transpose %18, [1, 0] : vector<8x32xf32> -> vector<32x8xf32>
    %c0_8 = arith.constant 0 : index
    %c0_9 = arith.constant 0 : index
    %c0_10 = arith.constant 0 : index
    %20 = vector.load %arg5[%c0_8, %c0_9, %c0_10] : memref<1x96x32xf32, #tpu.memory_space<vmem>>, vector<1x96x32xf32>
    %21 = vector.shape_cast %20 : vector<1x96x32xf32> to vector<96x32xf32>
    %cst_11 = arith.constant dense<0.000000e+00> : vector<96x8xf32>
    %22 = tpu.matmul %21, %19, %cst_11 {dimension_numbers = #tpu.dot_dimension_numbers<[1], [0], [0], [1], [0, 0, 1, 1], [], []>} : vector<96x32xf32>, vector<32x8xf32>, vector<96x8xf32> -> vector<96x8xf32>
    %23 = vector.extract_strided_slice %22 {offsets = [0, 0], sizes = [32, 8], strides = [1, 1]} : vector<96x8xf32> to vector<32x8xf32>
    %cst_12 = arith.constant 0.353553385 : f32
    %24 = vector.broadcast %cst_12 : f32 to vector<32x8xf32>
    %25 = arith.mulf %23, %24 : vector<32x8xf32>
    %26 = vector.extract_strided_slice %22 {offsets = [32, 0], sizes = [32, 8], strides = [1, 1]} : vector<96x8xf32> to vector<32x8xf32>
    %27 = vector.extract_strided_slice %22 {offsets = [64, 0], sizes = [32, 8], strides = [1, 1]} : vector<96x8xf32> to vector<32x8xf32>
    %28 = vector.shape_cast %25 : vector<32x8xf32> to vector<4x8x8xf32>
    %29 = vector.shape_cast %26 : vector<32x8xf32> to vector<4x8x8xf32>
    %30 = vector.shape_cast %27 : vector<32x8xf32> to vector<4x8x8xf32>
    %c0_13 = arith.constant 0 : index
    %c0_14 = arith.constant 0 : index
    %31 = vector.load %arg10[%c0_13, %c0_14] : memref<8x8xf32, #tpu.memory_space<vmem>>, vector<8x8xf32>
    %32 = vector.shape_cast %31 : vector<8x8xf32> to vector<1x8x8xf32>
    %c0_15 = arith.constant 0 : index
    %c0_16 = arith.constant 0 : index
    %33 = vector.load %arg11[%c0_15, %c0_16] : memref<8x8xf32, #tpu.memory_space<vmem>>, vector<8x8xf32>
    %34 = vector.shape_cast %33 : vector<8x8xf32> to vector<1x8x8xf32>
    %35 = vector.broadcast %32 : vector<1x8x8xf32> to vector<4x8x8xf32>
    %36 = arith.mulf %28, %35 : vector<4x8x8xf32>
    %37 = vector.extract_strided_slice %28 {offsets = [0, 4, 0], sizes = [4, 4, 8], strides = [1, 1, 1]} : vector<4x8x8xf32> to vector<4x4x8xf32>
    %38 = vector.extract_strided_slice %28 {offsets = [0, 0, 0], sizes = [4, 4, 8], strides = [1, 1, 1]} : vector<4x8x8xf32> to vector<4x4x8xf32>
    %39 = tpu.concatenate %37, %38 in 1 : vector<4x4x8xf32>, vector<4x4x8xf32> -> vector<4x8x8xf32>
    %40 = vector.broadcast %34 : vector<1x8x8xf32> to vector<4x8x8xf32>
    %41 = arith.mulf %39, %40 : vector<4x8x8xf32>
    %42 = arith.addf %36, %41 : vector<4x8x8xf32>
    %43 = vector.broadcast %32 : vector<1x8x8xf32> to vector<4x8x8xf32>
    %44 = arith.mulf %29, %43 : vector<4x8x8xf32>
    %45 = vector.extract_strided_slice %29 {offsets = [0, 4, 0], sizes = [4, 4, 8], strides = [1, 1, 1]} : vector<4x8x8xf32> to vector<4x4x8xf32>
    %46 = vector.extract_strided_slice %29 {offsets = [0, 0, 0], sizes = [4, 4, 8], strides = [1, 1, 1]} : vector<4x8x8xf32> to vector<4x4x8xf32>
    %47 = tpu.concatenate %45, %46 in 1 : vector<4x4x8xf32>, vector<4x4x8xf32> -> vector<4x8x8xf32>
    %48 = vector.broadcast %34 : vector<1x8x8xf32> to vector<4x8x8xf32>
    %49 = arith.mulf %47, %48 : vector<4x8x8xf32>
    %50 = arith.addf %44, %49 : vector<4x8x8xf32>
    "tpu.trace_start"() <{level = 10 : i32, message = "hdq,hdk->hqk"}> : () -> ()
    %cst_17 = arith.constant dense<0.000000e+00> : vector<4x8x8xf32>
    %51 = tpu.matmul %42, %50, %cst_17 {dimension_numbers = #tpu.dot_dimension_numbers<[1], [1], [2], [2], [0, 0, 0, 2, 1, 2], [0], [0]>} : vector<4x8x8xf32>, vector<4x8x8xf32>, vector<4x8x8xf32> -> vector<4x8x8xf32>
    "tpu.trace_stop"() : () -> ()
    %c0_18 = arith.constant 0 : index
    %c0_19 = arith.constant 0 : index
    %c0_20 = arith.constant 0 : index
    %52 = vector.load %arg3[%c0_18, %c0_19, %c0_20] : memref<1x1x8xf32, #tpu.memory_space<vmem>>, vector<1x1x8xf32>
    %53 = vector.shape_cast %52 : vector<1x1x8xf32> to vector<1x8xf32>
    %cst_21 = arith.constant 1.000000e+00 : f32
    %54 = vector.broadcast %cst_21 : f32 to vector<1x8xf32>
    %55 = arith.subf %53, %54 : vector<1x8xf32>
    %cst_22 = arith.constant 1.000000e+30 : f32
    %56 = vector.broadcast %cst_22 : f32 to vector<1x8xf32>
    %57 = arith.mulf %55, %56 : vector<1x8xf32>
    %58 = vector.shape_cast %57 : vector<1x8xf32> to vector<1x1x8xf32>
    %59 = vector.broadcast %58 : vector<1x1x8xf32> to vector<4x8x8xf32>
    %60 = arith.addf %51, %59 : vector<4x8x8xf32>
    %cst_23 = arith.constant dense<0xFF800000> : vector<4x8xf32>
    %61 = vector.multi_reduction <maximumf>, %60, %cst_23 [2] : vector<4x8x8xf32> to vector<4x8xf32>
    %62 = vector.shape_cast %61 : vector<4x8xf32> to vector<4x8x1xf32>
    %63 = vector.broadcast %62 : vector<4x8x1xf32> to vector<4x8x8xf32>
    %64 = arith.subf %60, %63 : vector<4x8x8xf32>
    %65 = math.exp %64 : vector<4x8x8xf32>
    %cst_24 = arith.constant dense<0.000000e+00> : vector<4x8xf32>
    %66 = vector.multi_reduction <add>, %65, %cst_24 [2] : vector<4x8x8xf32> to vector<4x8xf32>
    %67 = vector.shape_cast %66 : vector<4x8xf32> to vector<4x8x1xf32>
    %cst_25 = arith.constant 1.000000e+00 : f32
    %68 = vector.broadcast %cst_25 : f32 to vector<4x8x1xf32>
    %69 = arith.divf %68, %67 : vector<4x8x1xf32>
    %70 = vector.broadcast %69 : vector<4x8x1xf32> to vector<4x8x8xf32>
    %71 = arith.mulf %65, %70 : vector<4x8x8xf32>
    "tpu.trace_start"() <{level = 10 : i32, message = "hdk,hqk->hdq"}> : () -> ()
    %cst_26 = arith.constant dense<0.000000e+00> : vector<4x8x8xf32>
    %72 = tpu.matmul %30, %71, %cst_26 {dimension_numbers = #tpu.dot_dimension_numbers<[2], [2], [1], [1], [0, 0, 0, 1, 1, 1], [0], [0]>} : vector<4x8x8xf32>, vector<4x8x8xf32>, vector<4x8x8xf32> -> vector<4x8x8xf32>
    "tpu.trace_stop"() : () -> ()
    %73 = vector.shape_cast %72 : vector<4x8x8xf32> to vector<32x8xf32>
    %c0_27 = arith.constant 0 : index
    %c0_28 = arith.constant 0 : index
    %c0_29 = arith.constant 0 : index
    %74 = vector.load %arg6[%c0_27, %c0_28, %c0_29] : memref<1x32x32xf32, #tpu.memory_space<vmem>>, vector<1x32x32xf32>
    %75 = vector.shape_cast %74 : vector<1x32x32xf32> to vector<32x32xf32>
    %cst_30 = arith.constant dense<0.000000e+00> : vector<8x32xf32>
    %76 = tpu.matmul %73, %75, %cst_30 {dimension_numbers = #tpu.dot_dimension_numbers<[0], [0], [1], [1], [0, 1, 1, 1], [], []>} : vector<32x8xf32>, vector<32x32xf32>, vector<8x32xf32> -> vector<8x32xf32>
    %77 = arith.addf %4, %76 : vector<8x32xf32>
    %c0_31 = arith.constant 0 : index
    %c0_32 = arith.constant 0 : index
    %c0_33 = arith.constant 0 : index
    %78 = vector.load %arg7[%c0_31, %c0_32, %c0_33] : memref<1x1x32xf32, #tpu.memory_space<vmem>>, vector<1x1x32xf32>
    %79 = vector.shape_cast %78 : vector<1x1x32xf32> to vector<1x32xf32>
    %80 = arith.mulf %77, %77 : vector<8x32xf32>
    %cst_34 = arith.constant dense<0.000000e+00> : vector<8xf32>
    %81 = vector.multi_reduction <add>, %80, %cst_34 [1] : vector<8x32xf32> to vector<8xf32>
    %82 = vector.shape_cast %81 : vector<8xf32> to vector<8x1xf32>
    %cst_35 = arith.constant 3.200000e+01 : f32
    %83 = vector.broadcast %cst_35 : f32 to vector<8x1xf32>
    %84 = arith.divf %82, %83 : vector<8x1xf32>
    %cst_36 = arith.constant 1.1920929E-7 : f32
    %85 = vector.broadcast %cst_36 : f32 to vector<8x1xf32>
    %86 = arith.addf %84, %85 : vector<8x1xf32>
    %87 = math.rsqrt %86 : vector<8x1xf32>
    %88 = vector.broadcast %87 : vector<8x1xf32> to vector<8x32xf32>
    %89 = arith.mulf %77, %88 : vector<8x32xf32>
    %90 = vector.broadcast %79 : vector<1x32xf32> to vector<8x32xf32>
    %91 = arith.mulf %89, %90 : vector<8x32xf32>
    %c0_37 = arith.constant 0 : index
    %c0_38 = arith.constant 0 : index
    %c0_39 = arith.constant 0 : index
    %92 = vector.load %arg8[%c0_37, %c0_38, %c0_39] : memref<1x32x256xf32, #tpu.memory_space<vmem>>, vector<1x32x256xf32>
    %93 = vector.shape_cast %92 : vector<1x32x256xf32> to vector<32x256xf32>
    %cst_40 = arith.constant dense<0.000000e+00> : vector<8x256xf32>
    %94 = tpu.matmul %91, %93, %cst_40 {dimension_numbers = #tpu.dot_dimension_numbers<[1], [0], [0], [1], [0, 0, 1, 1], [], []>} : vector<8x32xf32>, vector<32x256xf32>, vector<8x256xf32> -> vector<8x256xf32>
    %95 = vector.extract_strided_slice %94 {offsets = [0, 0], sizes = [8, 128], strides = [1, 1]} : vector<8x256xf32> to vector<8x128xf32>
    %96 = vector.extract_strided_slice %94 {offsets = [0, 128], sizes = [8, 128], strides = [1, 1]} : vector<8x256xf32> to vector<8x128xf32>
    %97 = arith.negf %95 : vector<8x128xf32>
    %98 = math.exp %97 : vector<8x128xf32>
    %cst_41 = arith.constant 1.000000e+00 : f32
    %99 = vector.broadcast %cst_41 : f32 to vector<8x128xf32>
    %100 = arith.addf %99, %98 : vector<8x128xf32>
    %101 = arith.divf %99, %100 : vector<8x128xf32>
    %102 = arith.mulf %95, %101 : vector<8x128xf32>
    %103 = arith.mulf %102, %96 : vector<8x128xf32>
    %c0_42 = arith.constant 0 : index
    %c0_43 = arith.constant 0 : index
    %c0_44 = arith.constant 0 : index
    %104 = vector.load %arg9[%c0_42, %c0_43, %c0_44] : memref<1x128x32xf32, #tpu.memory_space<vmem>>, vector<1x128x32xf32>
    %105 = vector.shape_cast %104 : vector<1x128x32xf32> to vector<128x32xf32>
    %cst_45 = arith.constant dense<0.000000e+00> : vector<8x32xf32>
    %106 = tpu.matmul %103, %105, %cst_45 {dimension_numbers = #tpu.dot_dimension_numbers<[1], [0], [0], [1], [0, 0, 1, 1], [], []>} : vector<8x128xf32>, vector<128x32xf32>, vector<8x32xf32> -> vector<8x32xf32>
    %107 = arith.addf %77, %106 : vector<8x32xf32>
    %c0_46 = arith.constant 0 : index
    %c0_47 = arith.constant 0 : index
    %c0_48 = arith.constant 0 : index
    %108 = vector.load %arg12[%c0_46, %c0_47, %c0_48] : memref<1x8x32xf32, #tpu.memory_space<vmem>>, vector<1x8x32xf32>
    %109 = vector.shape_cast %108 : vector<1x8x32xf32> to vector<8x32xf32>
    %110 = vector.shape_cast %107 : vector<8x32xf32> to vector<1x8x32xf32>
    tpu.vector_store %arg12[%c0_46, %c0_47, %c0_48], %110 {strides = array<i32>} : memref<1x8x32xf32, #tpu.memory_space<vmem>>, vector<1x8x32xf32>,
    return
  }
  func.func @transform_0(%arg0: i32, %arg1: i32) -> (i32, i32, i32) {
    %c0_i32 = arith.constant 0 : i32
    %c0_i32_0 = arith.constant 0 : i32
    %c0_i32_1 = arith.constant 0 : i32
    return %arg0, %c0_i32, %c0_i32_0 : i32, i32, i32
  }
  func.func @transform_1(%arg0: i32, %arg1: i32) -> (i32, i32, i32) {
    %c0_i32 = arith.constant 0 : i32
    %c0_i32_0 = arith.constant 0 : i32
    %c0_i32_1 = arith.constant 0 : i32
    return %arg0, %c0_i32, %c0_i32_0 : i32, i32, i32
  }
  func.func @transform_2(%arg0: i32, %arg1: i32) -> (i32, i32, i32) {
    %c0_i32 = arith.constant 0 : i32
    %c0_i32_0 = arith.constant 0 : i32
    %c0_i32_1 = arith.constant 0 : i32
    return %arg1, %c0_i32, %c0_i32_0 : i32, i32, i32
  }
  func.func @transform_3(%arg0: i32, %arg1: i32) -> (i32, i32, i32) {
    %c0_i32 = arith.constant 0 : i32
    %c0_i32_0 = arith.constant 0 : i32
    %c0_i32_1 = arith.constant 0 : i32
    return %arg1, %c0_i32, %c0_i32_0 : i32, i32, i32
  }
  func.func @transform_4(%arg0: i32, %arg1: i32) -> (i32, i32, i32) {
    %c0_i32 = arith.constant 0 : i32
    %c0_i32_0 = arith.constant 0 : i32
    %c0_i32_1 = arith.constant 0 : i32
    return %arg1, %c0_i32, %c0_i32_0 : i32, i32, i32
  }
  func.func @transform_5(%arg0: i32, %arg1: i32) -> (i32, i32, i32) {
    %c0_i32 = arith.constant 0 : i32
    %c0_i32_0 = arith.constant 0 : i32
    %c0_i32_1 = arith.constant 0 : i32
    return %arg1, %c0_i32, %c0_i32_0 : i32, i32, i32
  }
  func.func @transform_6(%arg0: i32, %arg1: i32) -> (i32, i32, i32) {
    %c0_i32 = arith.constant 0 : i32
    %c0_i32_0 = arith.constant 0 : i32
    %c0_i32_1 = arith.constant 0 : i32
    return %arg1, %c0_i32, %c0_i32_0 : i32, i32, i32
  }
  func.func @transform_7(%arg0: i32, %arg1: i32) -> (i32, i32, i32) {
    %c0_i32 = arith.constant 0 : i32
    %c0_i32_0 = arith.constant 0 : i32
    %c0_i32_1 = arith.constant 0 : i32
    return %arg1, %c0_i32, %c0_i32_0 : i32, i32, i32
  }
  func.func @transform_8(%arg0: i32, %arg1: i32) -> (i32, i32) {
    %c0_i32 = arith.constant 0 : i32
    %c0_i32_0 = arith.constant 0 : i32
    %c0_i32_1 = arith.constant 0 : i32
    return %c0_i32, %c0_i32_0 : i32, i32
  }
  func.func @transform_9(%arg0: i32, %arg1: i32) -> (i32, i32) {
    %c0_i32 = arith.constant 0 : i32
    %c0_i32_0 = arith.constant 0 : i32
    %c0_i32_1 = arith.constant 0 : i32
    return %c0_i32, %c0_i32_0 : i32, i32
  }
  func.func @transform_10(%arg0: i32, %arg1: i32) -> (i32, i32, i32) {
    %c0_i32 = arith.constant 0 : i32
    %c0_i32_0 = arith.constant 0 : i32
    %c0_i32_1 = arith.constant 0 : i32
    return %arg0, %c0_i32, %c0_i32_0 : i32, i32, i32
  }
}

</mosaic_0001>

<bundles_post_ra>
// kernel: tpu_custom_call.1
= control target key start
LH: loop header
LB: loop body
LE: loop exit
PB: predicated region body
PF: predicated region fallthrough
CT: control target
= control target key end

     0   :  { %s2099_s0 = inlined_call_operand.vmem [shape: f32[2,8,32], index: 0, kind: input, shape index: {}]   ;;  %s2100_s1 = inlined_call_operand.vmem [shape: f32[2,1,8], index: 1, kind: input, shape index: {}]   ;;  %s2101_s2 = inlined_call_operand.vmem [shape: f32[2,1,32], index: 2, kind: input, shape index: {}]   ;;  %s2102_s3 = inlined_call_operand.vmem [shape: f32[2,96,32], index: 3, kind: input, shape index: {}]   ;;  %s2103_s4 = inlined_call_operand.vmem [shape: f32[2,32,32], index: 4, kind: input, shape index: {}]   ;;  %s2104_s5 = inlined_call_operand.vmem [shape: f32[2,1,32], index: 5, kind: input, shape index: {}]   ;;  %s2105_s6 = inlined_call_operand.vmem [shape: f32[2,32,256], index: 6, kind: input, shape index: {}]   ;;  %s2106_s7 = inlined_call_operand.vmem [shape: f32[2,128,32], index: 7, kind: input, shape index: {}]   ;;  %s2107_s8 = inlined_call_operand.vmem [shape: f32[8,8], index: 8, kind: input, shape index: {}]   ;;  %s2108_s9 = inlined_call_operand.vmem [shape: f32[8,8], index: 9, kind: input, shape index: {}]   ;;  %s2109_s10 = inlined_call_operand.hbm [shape: f32[2,8,32], index: 10, kind: output, shape index: {}]  }
   0x1   :  { %2124 = sst [smem:[#allocation17_spill]] %s2099_s0 }
   0x2   :  { %2125 = sst [smem:[#allocation18_spill]] %s2109_s10 }
   0x3   :  { %15 = vsyncpa [#allocation3], 0 }
   0x4   :  { %17 = vsyncpa [#allocation3 + $0x1], 0  ;;  %s1786_s13 = smov 0   ;;  %s1788_s14 = smov 0  }
   0x5   :  { %s1790_s15 = smov 0   ;;  %s1792_s16 = smov 0  }
   0x6   :  { %s1794_s17 = smov 0   ;;  %s1796_s18 = smov 0  }
   0x7   :  { %s1798_s19 = smov 0   ;;  %s1800_s20 = smov 0  }
   0x8 LB: > { %2126 = sst [smem:[#allocation5_spill]] %s1700_s13  ;;  %s1478_s21 = sadd.s32 4294967295, %s1728_s20   ;;  %s1728_s20 = sphi %s1800_s20, %s23_s20   ;;  %s1724_s19 = sphi %s1798_s19, %s2157_s19   ;;  %s1720_s18 = sphi %s1796_s18, %s2156_s18   ;;  %s1716_s17 = sphi %s1794_s17, %s2155_s17   ;;  %s1712_s16 = sphi %s1792_s16, %s2154_s16   ;;  %s1708_s15 = sphi %s1790_s15, %s2153_s15   ;;  %s1704_s14 = sphi %s1788_s14, %s2152_s14   ;;  %s1700_s13 = sphi %s1786_s13, %s2151_s13  }
   0x9   : > { %2127 = sst [smem:[#allocation6_spill]] %s1704_s14  ;;  %s1479_s22 = sadd.s32 4294967294, %s1728_s20  }
   0xa   : > { %2128 = sst [smem:[#allocation7_spill]] %s1708_s15  ;;  %s32_s23 = sadd.s32 1, %s1720_s18 }
   0xb   : > { %2129 = sst [smem:[#allocation8_spill]] %s1716_s17  ;;  %p33_p0 = scmp.ge.s32.totalorder %s32_s23, 2 }
   0xc   : > { %2130 = sst [smem:[#allocation9_spill]] %s1720_s18  ;;  %s35_s24 = sadd.s32 1, %s1724_s19 }
   0xd   : > { %2131 = sst [smem:[#allocation10_spill]] %s1724_s19  ;;  %p302_p1 = scmp.ne.s32.totalorder %s1708_s15, %s1704_s14 }
   0xe   : > { %2132 = sst [smem:[#allocation11_spill]] %s1728_s20  ;;  %p303_p2 = scmp.eq.s32.totalorder %s1478_s21, 3 }
   0xf   : > { %s2159_s23 = smov (%p33_p0, %s32_s23), 0  ;;  %s2161_s24 = smov (!%p33_p0, %s35_s24), %s1724_s19 }
  0x10   : > { %2133 = sst [smem:[#allocation12_spill]] %s2159_s23  ;;  %p1835_p3 = por %p303_p2, %p302_p1 }
  0x11   : > { %p308_p4 = scmp.ne.s32.totalorder %s1704_s14, %s1700_s13  ;;  %p37_p5 = scmp.ge.s32.totalorder %s2161_s24, 2 }
  0x12   : > { %s2134_s25 = scalar_select %p1835_p3, 1, 0 }
  0x13   : > { %p309_p6 = scmp.eq.s32.totalorder %s1479_s22, 3  ;;  %p1482_p7 = scmp.ge.s32.totalorder %s1728_s20, 1 }
  0x14   : > { %2135 = sst [smem:[#allocation13_spill]] %s2134_s25  ;;  %p390_p8 = scmp.lt.s32.totalorder %s1728_s20, 5 }
  0x15   : > { %s2163_s24 = smov (%p37_p5, %s2161_s24), 0  ;;  %p1845_p9 = por %p309_p6, %p308_p4 }
  0x16   : > { %2136 = sst [smem:[#allocation14_spill]] %s2163_s24  ;;  %p391_p10 = pnand %p1482_p7, %p390_p8 }
  0x17   : > { %s2137_s26 = scalar_select %p1845_p9, 1, 0 }
  0x18   : > { %s289_s27 = ssub.s32 %s1724_s19, %s2163_s24  ;;  %s292_s28 = sadd.s32 1, %s1708_s15 }
  0x19   : > { %2138 = sst [smem:[#allocation15_spill]] %s2137_s26  ;;  %p290_p11 = scmp.eq.s32.totalorder %s289_s27, 0 }
  0x1a   : > { %394 = sbr.rel (%p391_p10) target bundleno = 1772 (0x6ec), region = 60  ;;  %s2111_s30 = sand.u32 (!%p391_p10), 1, %s1704_s14  }
  0x1b   : > { %s1853_s29 = scalar_select %p290_p11, %s1708_s15, %s292_s28  }
  0x1c   : > { %p456_p12 = scmp.lt.s32.totalorder (!%p391_p10), %s1716_s17, 1  ;;  %s1483_s11 = sshll.u32 (!%p391_p10), %s2111_s30, 3 }
  0x1d   : > { %2139 = sst [smem:[#allocation16_spill]] %s1853_s29  ;;  %p463_p13 = scmp.lt.s32.totalorder (!%p391_p10), %s1712_s16, 1 }
  0x1e   : > { %s2140_s0 = sld [smem:[#allocation17_spill]] (!%p391_p10)  ;;  %s1906_s20 = scalar_lea.vmem (!%p391_p10), [#allocation2], %s1483_s11 }
  0x1f   : > { %s1861_s12 = scalar_select %p456_p12, %s1716_s17, 1 }
  0x20   : > { %s1864_s21 = scalar_select %p463_p13, %s1712_s16, 1 }
  0x21   : > { %s1484_s22 = sshll.u32 %s1861_s12, 3  ;;  %p1492_p0 = scmp.ne.s32.totalorder %s1712_s16, 0 }
  0x22   : > { %s1532_s26 = smul.u32 96, %s1864_s21  ;;  %s1527_s13 = sshll.u32 %s1864_s21, 5 }
  0x23   : > { %s1883_s25 = scalar_lea.vmem %s2103_s4, %s1527_s13  ;;  %s478_s27 = scalar_lea.vmem %s2104_s5, %s1864_s21 }
  0x24   : > { %s459_s19 = scalar_lea.vmem %s2140_s0, %s1484_s22  ;;  %s1892_s23 = scalar_lea.vmem %s2102_s3, %s1532_s26 }
  0x25   : > { %s1528_s30 = sshll.u32 %s1864_s21, 6  ;;  %s1529_s15 = sshll.u32 %s1864_s21, 7 }
  0x26   : > { %s1898_s29 = scalar_lea.vmem %s2105_s6, %s1528_s30  ;;  %s1904_s13 = scalar_lea.vmem %s2106_s7, %s1529_s15 }
  0x27   : > { %492 = sbr.rel (%p1492_p0) target bundleno = 46 (0x2e), region = 64 }
  0x2c   : > { %v493_v0 = vld [vmem:[%s459_s19] sm:$0xff]  ;;  %vm494_vm0 = vcmask 261120  }
  0x2d   : > { %495 = vst.msk [vmem:[%s1906_s20] sm:$0xff] %vm494_vm0, %v493_v0 }
  0x2e PF: > { %vm499_vm1 = vcmask 261120   ;;  %v1730_v4 = vmov 32.0   ;;  %s2141_s15 = scalar_lea.vmem %s2101_s2, %s1864_s21  ;;  %v527_v24 = vld [vmem:[%s1892_s23] sm:$0xff]  ;;  %v528_v25 = vld [vmem:[%s1892_s23 + $0x8] sm:$0xff]  ;;  %v529_v26 = vld [vmem:[%s1892_s23 + $0x10] sm:$0xff]  ;;  %vm732_vm6 = vcmask 64512   ;;  %s2142_s28 = scalar_lea.vmem %s2100_s1, %s1861_s12 }
  0x2f   : > { %1608 = vrcp.f32 %v1730_v4  ;;  %v1606_v20 = vld [vmem:[%s2141_s15] ss:$0 sm:$0xff]  ;;  %v530_v27 = vld [vmem:[%s1892_s23 + $0x18] sm:$0xff]  ;;  %v532_v31 = vld [vmem:[%s1892_s23 + $0x28] sm:$0xff]  ;;  %s2143_s21 = sld [smem:[#allocation8_spill]] }
  0x30   : > { %v531_v28 = vld [vmem:[%s1892_s23 + $0x20] sm:$0xff]  ;;  %v534_v32 = vld [vmem:[%s1892_s23 + $0x38] sm:$0xff]  ;;  %v533_v41 = vld [vmem:[%s1892_s23 + $0x30] sm:$0xff] }
  0x31   : > { %v635_v33 = vld [vmem:[%s2107_s8] sm:$0xff]  ;;  %v536_v59 = vld [vmem:[%s1892_s23 + $0x48] sm:$0xff]  ;;  %v537_v60 = vld [vmem:[%s1892_s23 + $0x50] sm:$0xff] }
  0x32   : > { %v636_v34 = vld [vmem:[%s2108_s9] sm:$0xff] }
  0x33   : > { %v535_v58 = vld [vmem:[%s1892_s23 + $0x40] sm:$0xff] }
  0x34   : > { %v1911_v1 = vld [vmem:[%s1906_s20] sm:$0xff] }
  0x35   : > { %v498_v2 = vmul.f32 %v1911_v1, %v1911_v1  ;;  %v1609_v5 = vpop.eup %1608  ;;  %s1524_s30 = sshll.u32 %s2143_s21, 3 }
  0x36   : > { %v504_v6 = vmul.f32 32.0, %v1609_v5  ;;  %vm508_vm2 = vweird.f32 %v1609_v5 }
  0x37   : > { %v500_v3 = vsel %vm499_vm1, %v498_v2, 0.0 }
  0x38   : > { %501 = vadd.xlane.f32.xlu0 %v500_v3  ;;  %v505_v7 = vsub.f32 1.0, %v504_v6 }
  0x3a   : > { %v506_v8 = vmul.f32 %v1609_v5, %v505_v7 }
  0x3c   : > { %v507_v9 = vadd.f32 %v1609_v5, %v506_v8  ;;  %v538_v8 = vld [vmem:[%s1892_s23 + $0x58] sm:$0xff] }
  0x3e   : > { %v1916_v10 = vsel %vm508_vm2, %v1609_v5, %v507_v9 }
  0xab   : > { %v502_v11 = vpop.xlane.xlu0 %501 }
  0xac   : > { %v510_v12 = vmul.f32 %v1916_v10, %v502_v11 }
  0xae   : > { %v511_v13 = vadd.f32 1.1920929e-07, %v510_v12 }
  0xb0   : > { %1610 = vrsqrt.f32 %v511_v13  ;;  %vm518_vm4 = vweird.f32 %v511_v13 }
  0xb6   : > { %v1611_v14 = vpop.eup %1610 }
  0xb7   : > { %v513_v15 = vmul.f32 %v1611_v14, %v511_v13  ;;  %vm519_vm3 = vweird.f32 %v1611_v14 }
  0xb8   : > { %vm520_vm5 = vmor %vm518_vm4, %vm519_vm3 }
  0xb9   : > { %v514_v16 = vmul.f32 %v1611_v14, %v513_v15 }
  0xbb   : > { %v515_v17 = vmul.f32 0.5, %v514_v16 }
  0xbd   : > { %v516_v18 = vsub.f32 1.5, %v515_v17 }
  0xbf   : > { %v517_v19 = vmul.f32 %v1611_v14, %v516_v18 }
  0xc1   : > { %v521_v21 = vsel %vm520_vm5, %v1611_v14, %v517_v19 }
  0xc2   : > { %v522_v22 = vmul.f32 %v521_v21, %v1911_v1 }
  0xc4   : > { %v526_v23 = vmul.f32 %v1606_v20, %v522_v22 }
  0xc6   : > { %1493 = vmatpush.xpose.msk.msra.mxu0 %vm499_vm1, %v526_v23  ;;  %1530 = vmatpush.xpose.msk.msra.mxu1 %vm499_vm1, %v526_v23 }
  0xc7   : > { %1531 = vmatpush.xpose.msk.msra.mxu2 %vm499_vm1, %v526_v23 }
  0xc9   : > { %1494 = vmatmul.msk.f32.vlgmr.msra.gmra.mxu0 %vm499_vm1, %v527_v24  ;;  %1501 = vmatmul.msk.f32.vlgmr.msra.gmra.mxu1 %vm499_vm1, %v534_v32 }
  0xca   : > { %1504 = vmatmul.msk.f32.vlgmr.msra.gmra.mxu2 %vm499_vm1, %v537_v60 }
  0xd1   : > { %1495 = vmatmul.msk.f32.gmra.mxu0 %vm499_vm1, %v528_v25  ;;  %1502 = vmatmul.msk.f32.gmra.mxu1 %vm499_vm1, %v535_v58  ;;  %v694_v25 = vld [vmem:[%s2142_s28] sm:$0x1] }
  0xd2   : > { %1505 = vmatmul.msk.f32.gmra.mxu2 %vm499_vm1, %v538_v8 }
  0xd9   : > { %1496 = vmatmul.msk.f32.gmra.mxu0 %vm499_vm1, %v529_v26  ;;  %1503 = vmatmul.msk.f32.gmra.mxu1 %vm499_vm1, %v536_v59  ;;  %v1506_v26 = vadd.f32 -1.0, %v694_v25 }
  0xe1   : > { %1497 = vmatmul.msk.f32.gmra.mxu0 %vm499_vm1, %v530_v27 }
  0xe9   : > { %1498 = vmatmul.msk.f32.gmra.mxu0 %vm499_vm1, %v531_v28  ;;  %v696_v28 = vmul.f32 1e+30, %v1506_v26 }
  0xf1   : > { %1499 = vmatmul.msk.f32.gmra.mxu0 %vm499_vm1, %v532_v31 }
  0xf9   : > { %1500 = vmatmul.msk.f32.gmra.mxu0 %vm499_vm1, %v533_v41 }
 0x146   : > { %v595_v29 = vpop.f32.mrf.mxu0  ;;  %v616_v9 = vpop.f32.mrf.mxu1 }
 0x147   : > { %v631_v30 = vmul.f32 0.35355338, %v595_v29  ;;  %v669_v11 = vmul.f32 %v635_v33, %v616_v9  ;;  %v677_v12 = vrot.slane %v616_v9, 4 }
 0x149   : > { %v645_v35 = vrot.slane %v631_v30, 4  ;;  %v637_v36 = vmul.f32 %v635_v33, %v631_v30  ;;  %v689_v13 = vmul.f32 %v677_v12, %v636_v34  ;;  %v698_v30 = vperm.slane %v696_v28, 0 }
 0x14b   : > { %v658_v37 = vmul.f32 %v645_v35, %v636_v34  ;;  %v693_v14 = vadd.f32 %v689_v13, %v669_v11 }
 0x14d   : > { %v662_v38 = vadd.f32 %v658_v37, %v637_v36  ;;  %v1971_v29 = vpop.f32.mrf.mxu2 }
 0x14e   : > { %v598_v39 = vpop.f32.mrf.mxu0  ;;  %v1962_v24 = vpop.f32.mrf.mxu1 }
 0x14f   : > { %v632_v40 = vmul.f32 0.35355338, %v598_v39  ;;  %700 = vxpose.xlu1.b32.start.end [1/1] (short) (narrow) %v662_v38, 8 }
 0x151   : > { %v646_v42 = vrot.slane %v632_v40, 4  ;;  %v638_v43 = vmul.f32 %v635_v33, %v632_v40 }
 0x153   : > { %v659_v44 = vmul.f32 %v646_v42, %v636_v34 }
 0x155   : > { %v663_v45 = vadd.f32 %v659_v44, %v638_v43 }
 0x156   : > { %v601_v46 = vpop.f32.mrf.mxu0  ;;  %v1969_v27 = vpop.f32.mrf.mxu1 }
 0x157   : > { %v633_v47 = vmul.f32 0.35355338, %v601_v46  ;;  %756 = vxpose.xlu0.b32.start.end [1/1] (short) (narrow) %v663_v45, 8 }
 0x159   : > { %v639_v48 = vmul.f32 %v635_v33, %v633_v47  ;;  %v647_v49 = vrot.slane %v633_v47, 4 }
 0x15b   : > { %v660_v50 = vmul.f32 %v647_v49, %v636_v34 }
 0x15d   : > { %v664_v51 = vadd.f32 %v660_v50, %v639_v48 }
 0x15e   : > { %v604_v52 = vpop.f32.mrf.mxu0 }
 0x15f   : > { %v634_v53 = vmul.f32 0.35355338, %v604_v52  ;;  %811 = vxpose.xlu1.b32.start.end [1/1] (short) (narrow) %v664_v51, 8 }
 0x161   : > { %v648_v54 = vrot.slane %v634_v53, 4  ;;  %v640_v55 = vmul.f32 %v635_v33, %v634_v53 }
 0x163   : > { %v661_v56 = vmul.f32 %v648_v54, %v636_v34 }
 0x165   : > { %v665_v57 = vadd.f32 %v661_v56, %v640_v55 }
 0x166   : > { %v607_v61 = vpop.f32.mrf.mxu0 }
 0x167   : > { %866 = vxpose.xlu2.b32.start.end [1/1] (short) (narrow) %v665_v57, 8  ;;  %v666_v62 = vmul.f32 %v635_v33, %v607_v61  ;;  %v674_v63 = vrot.slane %v607_v61, 4 }
 0x169   : > { %v686_v0 = vmul.f32 %v674_v63, %v636_v34 }
 0x16b   : > { %v690_v2 = vadd.f32 %v686_v0, %v666_v62 }
 0x16d   : > { %751 = vmatpush.msrb.mxu1 %v690_v2 }
 0x16e   : > { %v610_v3 = vpop.f32.mrf.mxu0 }
 0x16f   : > { %v667_v4 = vmul.f32 %v635_v33, %v610_v3  ;;  %v675_v5 = vrot.slane %v610_v3, 4  ;;  %916 = vmatpush.msra.mxu1 %v693_v14 }
 0x171   : > { %v687_v6 = vmul.f32 %v675_v5, %v636_v34 }
 0x173   : > { %v691_v7 = vadd.f32 %v687_v6, %v667_v4 }
 0x175   : > { %806 = vmatpush.msrb.mxu2 %v691_v7 }
 0x176   : > { %v613_v15 = vpop.f32.mrf.mxu0 }
 0x177   : > { %v676_v16 = vrot.slane %v613_v15, 4  ;;  %v668_v17 = vmul.f32 %v635_v33, %v613_v15 }
 0x179   : > { %v688_v18 = vmul.f32 %v676_v16, %v636_v34  ;;  %v1974_v34 = vpop.f32.mrf.mxu2 }
 0x17b   : > { %v692_v19 = vadd.f32 %v688_v18, %v668_v17 }
 0x17d   : > { %861 = vmatpush.msra.mxu3 %v692_v19 }
 0x1f3   : > { %v716_v20 = vpop.trf.xlu1 }
 0x1f4   : > { %1507 = vmatmul.msk.f32.vlgmr.msrb.gmra.mxu1 %vm732_vm6, %v716_v20 }
 0x1fb   : > { %v772_v21 = vpop.trf.xlu0 }
 0x1fc   : > { %1508 = vmatmul.msk.f32.vlgmr.msrb.gmra.mxu2 %vm732_vm6, %v772_v21 }
 0x200   : > { %v882_v22 = vpop.trf.xlu2 }
 0x201   : > { %1510 = vmatmul.msk.f32.vlgmr.msra.gmra.mxu1 %vm732_vm6, %v882_v22 }
 0x203   : > { %v827_v23 = vpop.trf.xlu1 }
 0x204   : > { %1509 = vmatmul.msk.f32.vlgmr.msra.gmra.mxu3 %vm732_vm6, %v827_v23 }
 0x271   : > { %v753_v31 = vpop.f32.mrf.mxu1 }
 0x272   : > { %v754_v32 = vadd.f32 %v753_v31, %v698_v30 }
 0x274   : > { %v921_v33 = vsel %vm732_vm6, %v754_v32, -inf }
 0x275   : > { %922 = vmax.xlane.f32.xlu2 %v921_v33 }
 0x27e   : > { %v918_v35 = vpop.f32.mrf.mxu1 }
 0x27f   : > { %v919_v36 = vadd.f32 %v918_v35, %v698_v30  ;;  %v808_v37 = vpop.f32.mrf.mxu2 }
 0x280   : > { %v809_v38 = vadd.f32 %v808_v37, %v698_v30 }
 0x281   : > { %v930_v39 = vsel %vm732_vm6, %v919_v36, -inf }
 0x282   : > { %931 = vmax.xlane.f32.xlu0 %v930_v39  ;;  %v924_v40 = vsel %vm732_vm6, %v809_v38, -inf }
 0x283   : > { %925 = vmax.xlane.f32.xlu1 %v924_v40 }
 0x287   : > { %v863_v41 = vpop.f32.mrf.mxu3 }
 0x288   : > { %v864_v42 = vadd.f32 %v863_v41, %v698_v30 }
 0x28a   : > { %v927_v43 = vsel %vm732_vm6, %v864_v42, -inf }
 0x28b   : > { %928 = vmax.xlane.f32.xlu1 %v927_v43 }
 0x2e8   : > { %v923_v44 = vpop.xlane.xlu2 %922 }
 0x2e9   : > { %v933_v45 = vsub.f32 %v754_v32, %v923_v44 }
 0x2eb   : > { %v937_v46 = vmul.f32 1.442695, %v933_v45 }
 0x2ed   : > { %1612 = vpow2.f32 %v937_v46 }
 0x2f3   : > { %v1613_v47 = vpop.eup %1612 }
 0x2f4   : > { %v945_v48 = vsel %vm732_vm6, %v1613_v47, 0.0 }
 0x2f5   : > { %v932_v49 = vpop.xlane.xlu0 %931  ;;  %946 = vadd.xlane.f32.xlu1 %v945_v48 }
 0x2f6   : > { %v936_v50 = vsub.f32 %v919_v36, %v932_v49  ;;  %v926_v51 = vpop.xlane.xlu1 %925 }
 0x2f7   : > { %v934_v52 = vsub.f32 %v809_v38, %v926_v51 }
 0x2f8   : > { %v943_v53 = vmul.f32 1.442695, %v936_v50 }
 0x2f9   : > { %v939_v54 = vmul.f32 1.442695, %v934_v52 }
 0x2fa   : > { %1614 = vpow2.f32 %v943_v53  ;;  %v1128_v53 = vld [vmem:[%s1883_s25 + $0x18] sm:$0xff] }
 0x2fb   : > { %1616 = vpow2.f32 %v939_v54  ;;  %v1127_v54 = vld [vmem:[%s1883_s25 + $0x10] sm:$0xff] }
 0x2fe   : > { %v929_v55 = vpop.xlane.xlu1 %928 }
 0x2ff   : > { %v935_v56 = vsub.f32 %v864_v42, %v929_v55 }
 0x300   : > { %v1980_v57 = vpop.eup %1614 }
 0x301   : > { %v1982_v58 = vpop.eup %1616  ;;  %v941_v59 = vmul.f32 1.442695, %v935_v56  ;;  %v954_v60 = vsel %vm732_vm6, %v1980_v57, 0.0  ;;  %v1125_v56 = vld [vmem:[%s1883_s25] sm:$0xff] }
 0x302   : > { %955 = vadd.xlane.f32.xlu1 %v954_v60  ;;  %v948_v61 = vsel %vm732_vm6, %v1982_v58, 0.0 }
 0x303   : > { %1618 = vpow2.f32 %v941_v59  ;;  %949 = vadd.xlane.f32.xlu2 %v948_v61 }
 0x309   : > { %v1988_v62 = vpop.eup %1618 }
 0x30a   : > { %v951_v63 = vsel %vm732_vm6, %v1988_v62, 0.0 }
 0x30b   : > { %952 = vadd.xlane.f32.xlu2 %v951_v63  ;;  %v1213_v63 = vld [vmem:[%s1898_s29 + $0x30] sm:$0xff] }
 0x368   : > { %v947_v0 = vpop.xlane.xlu1 %946 }
 0x369   : > { %1620 = vrcp.f32 %v947_v0  ;;  %v968_v5 = vand.u32 2147483648, %v947_v0  ;;  %v966_v7 = vand.u32 2147483647, %v947_v0  ;;  %vm962_vm8 = vweird.f32 %v947_v0 }
 0x36b   : > { %v969_v12 = vor.u32 1.1754944e-38, %v968_v5  ;;  %vm967_vm10 = vcmp.eq.f32.partialorder %v966_v7, 8.507059e+37  ;;  %v1210_v5 = vld [vmem:[%s1898_s29 + $0x18] sm:$0xff] }
 0x36f   : > { %v1621_v2 = vpop.eup %1620 }
 0x370   : > { %v958_v3 = vmul.f32 %v1621_v2, %v947_v0  ;;  %vm963_vm7 = vweird.f32 %v1621_v2  ;;  %v1214_v0 = vld [vmem:[%s1898_s29 + $0x38] sm:$0xff] }
 0x371   : > { %vm964_vm9 = vmor %vm962_vm8, %vm963_vm7 }
 0x372   : > { %v959_v4 = vsub.f32 1.0, %v958_v3  ;;  %v1212_v3 = vld [vmem:[%s1898_s29 + $0x28] sm:$0xff] }
 0x374   : > { %v960_v6 = vmul.f32 %v1621_v2, %v959_v4  ;;  %v1209_v4 = vld [vmem:[%s1898_s29 + $0x10] sm:$0xff] }
 0x375   : > { %v956_v8 = vpop.xlane.xlu1 %955 }
 0x376   : > { %v961_v9 = vadd.f32 %v1621_v2, %v960_v6  ;;  %1622 = vrcp.f32 %v956_v8  ;;  %v950_v11 = vpop.xlane.xlu2 %949  ;;  %v1013_v22 = vand.u32 2147483648, %v956_v8  ;;  %v1011_v26 = vand.u32 2147483647, %v956_v8  ;;  %v1208_v6 = vld [vmem:[%s1898_s29 + $0x8] sm:$0xff] }
 0x377   : > { %1624 = vrcp.f32 %v950_v11  ;;  %v983_v28 = vand.u32 2147483648, %v950_v11  ;;  %v981_v31 = vand.u32 2147483647, %v950_v11  ;;  %vm1007_vm13 = vweird.f32 %v956_v8 }
 0x378   : > { %v965_v13 = vsel %vm964_vm9, %v1621_v2, %v961_v9  ;;  %v1014_v33 = vor.u32 1.1754944e-38, %v1013_v22  ;;  %vm977_vm15 = vweird.f32 %v950_v11  ;;  %vm1012_vm0 = vcmp.eq.f32.partialorder %v1011_v26, 8.507059e+37  ;;  %v1211_v2 = vld [vmem:[%s1898_s29 + $0x20] sm:$0xff]  ;;  %v1292_v22 = vld [vmem:[%s1904_s13 + $0x68] sm:$0xff]  ;;  %v1289_v26 = vld [vmem:[%s1904_s13 + $0x50] sm:$0xff] }
 0x379   : > { %v970_v14 = vsel %vm967_vm10, %v969_v12, %v965_v13  ;;  %v984_v38 = vor.u32 1.1754944e-38, %v983_v28  ;;  %vm982_vm3 = vcmp.eq.f32.partialorder %v981_v31, 8.507059e+37  ;;  %v1288_v28 = vld [vmem:[%s1904_s13 + $0x48] sm:$0xff]  ;;  %v1286_v31 = vld [vmem:[%s1904_s13 + $0x38] sm:$0xff] }
 0x37a   : > { %v1017_v15 = vmul.f32 %v1613_v47, %v970_v14 }
 0x37c   : > { %v1623_v16 = vpop.eup %1622  ;;  %1511 = vmatpush.xpose.msk.msra.mxu2 %vm732_vm6, %v1017_v15 }
 0x37d   : > { %v1625_v17 = vpop.eup %1624  ;;  %v1003_v18 = vmul.f32 %v1623_v16, %v956_v8  ;;  %vm1008_vm11 = vweird.f32 %v1623_v16 }
 0x37e   : > { %v973_v19 = vmul.f32 %v1625_v17, %v950_v11  ;;  %v953_v20 = vpop.xlane.xlu2 %952  ;;  %vm978_vm12 = vweird.f32 %v1625_v17  ;;  %vm1009_vm14 = vmor %vm1007_vm13, %vm1008_vm11 }
 0x37f   : > { %v1004_v21 = vsub.f32 1.0, %v1003_v18  ;;  %1626 = vrcp.f32 %v953_v20  ;;  %1512 = vmatmul.msk.f32.vlgmr.msra.gmra.mxu2 %vm732_vm6, %v1962_v24  ;;  %vm979_vm2 = vmor %vm977_vm15, %vm978_vm12  ;;  %v998_v45 = vand.u32 2147483648, %v953_v20  ;;  %v996_v47 = vand.u32 2147483647, %v953_v20 }
 0x380   : > { %v974_v23 = vsub.f32 1.0, %v973_v19  ;;  %vm992_vm5 = vweird.f32 %v953_v20 }
 0x381   : > { %v1005_v25 = vmul.f32 %v1623_v16, %v1004_v21  ;;  %v999_v49 = vor.u32 1.1754944e-38, %v998_v45  ;;  %vm997_vm8 = vcmp.eq.f32.partialorder %v996_v47, 8.507059e+37  ;;  %v1293_v21 = vld [vmem:[%s1904_s13 + $0x70] sm:$0xff] }
 0x382   : > { %v975_v30 = vmul.f32 %v1625_v17, %v974_v23  ;;  %v1291_v23 = vld [vmem:[%s1904_s13 + $0x60] sm:$0xff] }
 0x383   : > { %v1006_v32 = vadd.f32 %v1623_v16, %v1005_v25  ;;  %v1290_v25 = vld [vmem:[%s1904_s13 + $0x58] sm:$0xff] }
 0x384   : > { %v976_v35 = vadd.f32 %v1625_v17, %v975_v30  ;;  %v1287_v30 = vld [vmem:[%s1904_s13 + $0x40] sm:$0xff] }
 0x385   : > { %v1627_v36 = vpop.eup %1626  ;;  %v1010_v37 = vsel %vm1009_vm14, %v1623_v16, %v1006_v32  ;;  %v1285_v32 = vld [vmem:[%s1904_s13 + $0x30] sm:$0xff] }
 0x386   : > { %v1015_v24 = vsel %vm1012_vm0, %v1014_v33, %v1010_v37  ;;  %v988_v39 = vmul.f32 %v1627_v36, %v953_v20  ;;  %v980_v40 = vsel %vm979_vm2, %v1625_v17, %v976_v35  ;;  %vm993_vm4 = vweird.f32 %v1627_v36  ;;  %v1294_v20 = vld [vmem:[%s1904_s13 + $0x78] sm:$0xff]  ;;  %v1284_v33 = vld [vmem:[%s1904_s13 + $0x28] sm:$0xff]  ;;  %v1283_v35 = vld [vmem:[%s1904_s13 + $0x20] sm:$0xff] }
 0x387   : > { %v1020_v41 = vmul.f32 %v1980_v57, %v1015_v24  ;;  %v985_v42 = vsel %vm982_vm3, %v984_v38, %v980_v40  ;;  %vm994_vm7 = vmor %vm992_vm5, %vm993_vm4  ;;  %v1281_v37 = vld [vmem:[%s1904_s13 + $0x10] sm:$0xff]  ;;  %v1280_v38 = vld [vmem:[%s1904_s13 + $0x8] sm:$0xff] }
 0x388   : > { %v989_v43 = vsub.f32 1.0, %v988_v39  ;;  %v1018_v44 = vmul.f32 %v1982_v58, %v985_v42  ;;  %v1279_v24 = vld [vmem:[%s1904_s13] sm:$0xff] }
 0x389   : > { %1517 = vmatpush.xpose.msk.msrb.mxu2 %vm732_vm6, %v1020_v41 }
 0x38a   : > { %v990_v46 = vmul.f32 %v1627_v36, %v989_v43  ;;  %1513 = vmatpush.xpose.msk.msrb.mxu3 %vm732_vm6, %v1018_v44 }
 0x38c   : > { %v991_v48 = vadd.f32 %v1627_v36, %v990_v46  ;;  %1518 = vmatmul.msk.f32.vlgmr.msrb.gmra.mxu2 %vm732_vm6, %v1974_v34  ;;  %v1126_v34 = vld [vmem:[%s1883_s25 + $0x8] sm:$0xff] }
 0x38d   : > { %1514 = vmatmul.msk.f32.vlgmr.msrb.gmra.mxu3 %vm732_vm6, %v1969_v27  ;;  %1250 = vmatpush.msra.mxu2 %v1214_v0 }
 0x38e   : > { %v995_v50 = vsel %vm994_vm7, %v1627_v36, %v991_v48  ;;  %1176 = vmatpush.msra.mxu3 %v1128_v53  ;;  %v1282_v36 = vld [vmem:[%s1904_s13 + $0x18] sm:$0xff]  ;;  %s1330_s13 = sshll.u32 %s1906_s20, 4  ;;  %s1331_s13 = int_to_ptr.vmem [resolvable:$true] %s1330_s13 }
 0x38f   : > { %v1000_v51 = vsel %vm997_vm8, %v999_v49, %v995_v50  ;;  %1251 = vmatpush.msra.mxu2 %v1212_v3 }
 0x390   : > { %v1019_v52 = vmul.f32 %v1988_v62, %v1000_v51  ;;  %1177 = vmatpush.msra.mxu3 %v1127_v54 }
 0x391   : > { %1252 = vmatpush.msra.mxu2 %v1210_v5 }
 0x392   : > { %1515 = vmatpush.xpose.msk.msrb.mxu1 %vm732_vm6, %v1019_v52  ;;  %1178 = vmatpush.msra.mxu3 %v1126_v34 }
 0x393   : > { %1253 = vmatpush.msra.mxu2 %v1208_v6 }
 0x394   : > { %1179 = vmatpush.msra.mxu3 %v1125_v56 }
 0x395   : > { %1516 = vmatmul.msk.f32.vlgmr.msrb.gmra.mxu1 %vm732_vm6, %v1971_v29 }
 0x396   : > { %1230 = vmatpush.msra.mxu1 %v1213_v63  ;;  %1295 = vmatpush.msrb.mxu3 %v1294_v20 }
 0x398   : > { %1231 = vmatpush.msra.mxu1 %v1211_v2  ;;  %1296 = vmatpush.msrb.mxu3 %v1293_v21 }
 0x39a   : > { %1232 = vmatpush.msra.mxu1 %v1209_v4  ;;  %1297 = vmatpush.msrb.mxu3 %v1292_v22 }
 0x39c   : > { %1298 = vmatpush.msrb.mxu3 %v1291_v23 }
 0x39e   : > { %1299 = vmatpush.msrb.mxu3 %v1290_v25 }
 0x3a0   : > { %1300 = vmatpush.msrb.mxu3 %v1289_v26 }
 0x3a2   : > { %1301 = vmatpush.msrb.mxu3 %v1288_v28 }
 0x3a4   : > { %1302 = vmatpush.msrb.mxu3 %v1287_v30 }
 0x3a6   : > { %1303 = vmatpush.msrb.mxu3 %v1286_v31 }
 0x3a8   : > { %1304 = vmatpush.msrb.mxu3 %v1285_v32 }
 0x3aa   : > { %1305 = vmatpush.msrb.mxu3 %v1284_v33 }
 0x3ac   : > { %1306 = vmatpush.msrb.mxu3 %v1283_v35 }
 0x3ae   : > { %1307 = vmatpush.msrb.mxu3 %v1282_v36 }
 0x3b0   : > { %1308 = vmatpush.msrb.mxu3 %v1281_v37 }
 0x3b2   : > { %1309 = vmatpush.msrb.mxu3 %v1280_v38 }
 0x3b4   : > { %1310 = vmatpush.msrb.mxu3 %v1279_v24 }
 0x402   : > { %v1044_v55 = vpop.f32.mrf.mxu2 }
 0x403   : > { %1129 = vxpose.xlu1.b32.start [1/4] (short) (narrow) %v1044_v55, 8 }
 0x40f   : > { %v1122_v58 = vpop.f32.mrf.mxu2 }
 0x410   : > { %v1070_v27 = vpop.f32.mrf.mxu3 }
 0x411   : > { %1130 = vxpose.xlu1.b32.cont [2/4] (short) (narrow) %v1070_v27, 8 }
 0x412   : > { %v1096_v57 = vpop.f32.mrf.mxu1 }
 0x419   : > { %1131 = vxpose.xlu1.b32.cont [3/4] (short) (narrow) %v1096_v57, 8 }
 0x421   : > { %1132 = vxpose.xlu1.b32.end [4/4] (short) (narrow) %v1122_v58, 8 }
 0x4ad   : > { %v1145_v29 = vpop.trf.xlu1 }
 0x4ae   : > { %1519 = vmatmul.msk.f32.vlgmr.msra.gmra.mxu3 %vm499_vm1, %v1145_v29 }
 0x531   : > { %v1181_v59 = vpop.f32.mrf.mxu3 }
 0x532   : > { %v2013_v60 = vadd.f32 %v1181_v59, %v1911_v1  ;;  %v1207_v1 = vld [vmem:[%s1898_s29] sm:$0xff]  ;;  %s2146_s29 = sld [smem:[#allocation18_spill]] }
 0x533   : > { %1233 = vmatpush.msra.mxu1 %v1207_v1 }
 0x534   : > { %v1186_v61 = vmul.f32 %v2013_v60, %v2013_v60 }
 0x536   : > { %v1187_v62 = vsel %vm499_vm1, %v1186_v61, 0.0 }
 0x537   : > { %1188 = vadd.xlane.f32.xlu2 %v1187_v62 }
 0x538   : > { %s1328_s10 = scalar_lea.hbm %s2146_s29, %s1524_s30  ;;  %s1654_s26 = scalar_lea.hbm %s2146_s29, 16 }
 0x539   : > { %s1332_s0 = sshll.u32 %s1328_s10, 4  ;;  %s1333_s0 = int_to_ptr.hbm [resolvable:$true] %s1332_s0 }
 0x53a   : > { %s1648_s16 = sshra.s32 %s1333_s0, 4  ;;  %s1649_s16 = int_to_ptr.hbm [resolvable:$true] %s1648_s16 }
 0x53b   : > { %s1650_s17 = scalar_lea.hbm %s1649_s16, 8  ;;  %p1655_p5 = scmp.lt.s32.totalorder %s1649_s16, %s2146_s29 }
 0x53c   : > { %p1651_p1 = scmp.ne.s32.totalorder %s1649_s16, %s1650_s17  ;;  %p1656_p6 = scmp.lt.s32.totalorder %s1654_s26, %s1650_s17 }
 0x53e   : > { %p1652_p2 = pnand %p1651_p1, %p1835_p3  ;;  %p1657_p7 = por %p1656_p6, %p1655_p5 }
 0x540   : > { %p1653_p4 = pneg %p1652_p2 }
 0x542   : > { %p1658_p8 = pnand %p1657_p7, %p1653_p4 }
 0x5aa   : > { %v1189_v7 = vpop.xlane.xlu2 %1188 }
 0x5ab   : > { %v1190_v8 = vmul.f32 %v1189_v7, %v1916_v10  ;;  %v1607_v10 = vld [vmem:[%s478_s27] ss:$0 sm:$0xff]  ;;  %s2144_s27 = sld [smem:[#allocation6_spill]] }
 0x5ad   : > { %v1191_v9 = vadd.f32 1.1920929e-07, %v1190_v8 }
 0x5af   : > { %1628 = vrsqrt.f32 %v1191_v9  ;;  %vm1198_vm9 = vweird.f32 %v1191_v9 }
 0x5b1   : > { %s2147_s14 = sand.u32 1, %s2144_s27  }
 0x5b2   : > { %s1318_s15 = scalar_lea.sflag [#allocation3], %s2147_s14 }
 0x5b5   : > { %v1629_v11 = vpop.eup %1628 }
 0x5b6   : > { %v1193_v12 = vmul.f32 %v1629_v11, %v1191_v9  ;;  %vm1199_vm6 = vweird.f32 %v1629_v11 }
 0x5b7   : > { %vm1200_vm10 = vmor %vm1198_vm9, %vm1199_vm6 }
 0x5b8   : > { %v1194_v13 = vmul.f32 %v1629_v11, %v1193_v12 }
 0x5ba   : > { %v1195_v14 = vmul.f32 0.5, %v1194_v13 }
 0x5bc   : > { %v1196_v15 = vsub.f32 1.5, %v1195_v14 }
 0x5be   : > { %v1197_v16 = vmul.f32 %v1629_v11, %v1196_v15 }
 0x5c0   : > { %v1201_v17 = vsel %vm1200_vm10, %v1629_v11, %v1197_v16 }
 0x5c1   : > { %v1202_v18 = vmul.f32 %v1201_v17, %v2013_v60 }
 0x5c3   : > { %v1206_v19 = vmul.f32 %v1607_v10, %v1202_v18 }
 0x5c5   : > { %1520 = vmatmul.msk.f32.vlgmr.msra.gmra.mxu1 %vm499_vm1, %v1206_v19  ;;  %1521 = vmatmul.msk.f32.vlgmr.msra.gmra.mxu2 %vm499_vm1, %v1206_v19 }
 0x642   : > { %v1235_v39 = vpop.f32.mrf.mxu1 }
 0x643   : > { %v1522_v40 = vmul.f32 -1.442695, %v1235_v39 }
 0x645   : > { %1630 = vpow2.f32 %v1522_v40 }
 0x648   : > { %v1255_v54 = vpop.f32.mrf.mxu2 }
 0x64b   : > { %v1631_v41 = vpop.eup %1630 }
 0x64c   : > { %v1261_v42 = vadd.f32 1.0, %v1631_v41 }
 0x64e   : > { %1632 = vrcp.f32 %v1261_v42  ;;  %v1273_v46 = vand.u32 2147483648, %v1261_v42  ;;  %v1271_v48 = vand.u32 2147483647, %v1261_v42  ;;  %vm1267_vm12 = vweird.f32 %v1261_v42 }
 0x650   : > { %v1274_v50 = vor.u32 1.1754944e-38, %v1273_v46  ;;  %vm1272_vm14 = vcmp.eq.f32.partialorder %v1271_v48, 8.507059e+37 }
 0x654   : > { %v1633_v43 = vpop.eup %1632 }
 0x655   : > { %v1263_v44 = vmul.f32 %v1633_v43, %v1261_v42  ;;  %vm1268_vm11 = vweird.f32 %v1633_v43 }
 0x656   : > { %vm1269_vm13 = vmor %vm1267_vm12, %vm1268_vm11 }
 0x657   : > { %v1264_v45 = vsub.f32 1.0, %v1263_v44 }
 0x659   : > { %v1265_v47 = vmul.f32 %v1633_v43, %v1264_v45 }
 0x65b   : > { %v1266_v49 = vadd.f32 %v1633_v43, %v1265_v47 }
 0x65d   : > { %v1270_v51 = vsel %vm1269_vm13, %v1633_v43, %v1266_v49 }
 0x65e   : > { %v1275_v52 = vsel %vm1272_vm14, %v1274_v50, %v1270_v51 }
 0x65f   : > { %v1277_v53 = vmul.f32 %v1275_v52, %v1235_v39 }
 0x661   : > { %v1278_v55 = vmul.f32 %v1277_v53, %v1255_v54 }
 0x663   : > { %1311 = vmatmul.f32.vlgmr.msrb.gmra.mxu3 %v1278_v55 }
 0x6e6   : > { %v1312_v34 = vpop.f32.mrf.mxu3 }
 0x6e7   : > { %v1315_v56 = vadd.f32 %v1312_v34, %v2013_v60 }
 0x6e9   : > { %1316 = vst.msk [vmem:[%s1906_s20] sm:$0xff] %vm499_vm1, %v1315_v56 }
 0x6ea   : > { %1661 = shalt.err (!%p1658_p8)
}
 0x6eb   : > { %1533 = dma.vmem_to_hbm [thread:$0]  (%p1835_p3), %s1331_s13, 128, %s1333_s0, %s1318_s15  }
 0x6ec PF: > { %s2148_s20 = sld [smem:[#allocation11_spill]] }
 0x6ed   : > { %s2149_s25 = sld [smem:[#allocation5_spill]] }
 0x6f2   : > { %p1539_p10 = scmp.ge.s32.totalorder %s2148_s20, 2 }
 0x6f3   : > { %s1344_s21 = sand.u32 1, %s2149_s25  }
 0x6f4   : > { %p1536_p11 = pnand %p1539_p10, %p1845_p9  ;;  %s1345_s27 = scalar_lea.sflag [#allocation3], %s1344_s21 }
 0x6f6   : > { %p1537_p12 = pneg %p1536_p11 }
 0x6f8   : > { %1695 = dma.done.wait (%p1537_p12), %s1345_s27, 128  }
 0x6f9   : > { %1697 = vsyncadd (%p1537_p12), %s1345_s27, 4294967168  ;;  %s23_s20 = sadd.s32 1, %s2148_s20   ;;  %s2151_s13 = sld [smem:[#allocation6_spill]] }
 0x6fa   : > { %p20_p13 = scmp.ge.s32.totalorder %s23_s20, 6   ;;  %s2152_s14 = sld [smem:[#allocation7_spill]] }
 0x6fb   : > { %s2153_s15 = sld [smem:[#allocation16_spill]] }
 0x6fc   : > { %s2154_s16 = sld [smem:[#allocation9_spill]]  ;;  %22 = sbr.rel (!%p20_p13) target bundleno = 8 (0x8), region = 120 }
 0x6fd   : > { %s2155_s17 = sld [smem:[#allocation10_spill]] }
 0x6fe   : > { %s2156_s18 = sld [smem:[#allocation12_spill]] }
 0x6ff   : > { %s2157_s19 = sld [smem:[#allocation14_spill]] }
 0x701   :  { %1351 = vsyncpa [#allocation3], 1 }
 0x702   :  { %1353 = vsyncpa [#allocation3 + $0x1], 1 }

</bundles_post_ra>
